<compile_context>
chip_gen: v7x
topology: tpu7x:2x2x1
jax: 0.10.0
libtpu: 0.0.40
codegen_flags: <defaults>
</compile_context>

<pallas_src>
import functools

import jax
import jax.numpy as jnp
from jax.experimental import pallas as pl
from jax.experimental.pallas import tpu as pltpu

LANE = 128
SUBLANE = 8


def _round_up(n, m):
    return ((n + m - 1) // m) * m


def mlp_kernel(x_ref, p_ref, o_ref):
    """Fused 2-layer MLP, batch on the lane axis, all compute on VPU/XLU.

    x_ref: (1, TILE_N)   input lane tile (batch on lanes)
    p_ref: (H_PAD, 3)    col0 = w1, col1 = b1 (row n_hidden is the constant-1
                         bias channel), col2 = w2 (row n_hidden holds b2)
    o_ref: (1, TILE_N)   output lane tile (lane-dense, unmasked store)
    """
    x_row = x_ref[...]                 # (1, TILE_N)
    w1 = p_ref[:, 0:1]                 # (H_PAD, 1)
    b1 = p_ref[:, 1:2]                 # (H_PAD, 1)
    w2 = p_ref[:, 2:3]                 # (H_PAD, 1)

    # Layer 1 (K = n_input = 1): outer product -> VPU broadcast FMA + relu.
    h = jnp.maximum(w1 * x_row + b1, 0.0)                    # (H_PAD, TILE_N)

    # Layer 2 (M = n_output = 1): VPU broadcast multiply + XLU sublane reduce.
    # b2 is folded in via the constant-1 hidden channel (relu(0*x+1) == 1);
    # padded hidden rows are exactly zero and contribute nothing.
    out = jnp.sum(w2 * h, axis=0, keepdims=True)             # (1, TILE_N)
    o_ref[...] = out.astype(o_ref.dtype)


def pack_params(w1, b1, w2, b2):
    """Pack / zero-pad all parameters once into a single (H_PAD, 3) tile.

    w1: (n_input=1, n_hidden)   b1: (1, n_hidden)
    w2: (n_hidden, n_output=1)  b2: (1, n_output=1)
    (weights stored as (in, out), i.e. transposed vs torch.nn.Linear)
    """
    n_input, n_hidden = w1.shape
    n_output = w2.shape[1]
    assert n_input == 1, "VPU outer-product path assumes n_input == 1"
    assert n_output == 1, "VPU sublane-reduce path assumes n_output == 1"
    h_pad = _round_up(n_hidden + 1, SUBLANE)   # +1 row: folded-b2 bias channel

    dtype = w1.dtype
    p = jnp.zeros((h_pad, 3), dtype)
    p = p.at[:n_hidden, 0].set(w1[0, :])       # w1 column
    p = p.at[:n_hidden, 1].set(b1[0, :])       # b1 column
    p = p.at[n_hidden, 1].set(1.0)             # constant-1 channel: relu(0*x+1)=1
    p = p.at[:n_hidden, 2].set(w2[:, 0])       # w2 column
    p = p.at[n_hidden, 2].set(b2[0, 0])        # b2 rides the constant-1 channel
    return p


@functools.partial(jax.jit, static_argnames=("tile_n",))
def net_forward(x, params, tile_n=8192):
    """x: (N, 1) -> (N, 1).  1-D 'parallel' grid over lane tiles of the batch."""
    n = x.shape[0]
    h_pad = params.shape[0]

    # Lane-dense tile (multiple of 128), no larger than needed for this N.
    tile_n = max(LANE, min(_round_up(tile_n, LANE), _round_up(n, LANE)))
    n_pad = _round_up(n, tile_n)

    # Flatten + pad the batch onto the lane axis (single cheap pad, no transpose).
    # TODO(synk): for ragged N at very large scale, a masked in-kernel tail
    # store would avoid this pad pass entirely.
    x_row = jnp.pad(x.reshape(-1), (0, n_pad - n)).reshape(1, n_pad)

    out_row = pl.pallas_call(
        mlp_kernel,
        out_shape=jax.ShapeDtypeStruct((1, n_pad), x.dtype),
        grid=(n_pad // tile_n,),
        in_specs=[
            pl.BlockSpec((1, tile_n), lambda i: (0, i)),    # batch lane tile
            pl.BlockSpec((h_pad, 3), lambda i: (0, 0)),     # resident weights
        ],
        out_specs=pl.BlockSpec((1, tile_n), lambda i: (0, i)),
        compiler_params=pltpu.CompilerParams(
            dimension_semantics=("parallel",),
        ),
    )(x_row, params)

    # Drop batch padding (padded lanes hold relu(b1) garbage) -> (N, 1).
    return out_row[0, :n].reshape(n, 1)


def init_linear_params(key, fan_in, fan_out, dtype=jnp.float32):
    """torch.nn.Linear default init: U(-1/sqrt(fan_in), 1/sqrt(fan_in)).
    Weight returned as (fan_in, fan_out) — transposed vs torch's (out, in)."""
    k_w, k_b = jax.random.split(key)
    bound = 1.0 / jnp.sqrt(jnp.asarray(fan_in, dtype))
    w = jax.random.uniform(k_w, (fan_in, fan_out), dtype, minval=-bound, maxval=bound)
    b = jax.random.uniform(k_b, (1, fan_out), dtype, minval=-bound, maxval=bound)
    return w, b


if __name__ == "__main__":
    # Shapes implied by the torch demo: x = linspace(-1, 1, 100).unsqueeze(1);
    # Net(n_input=1, n_hidden=32, n_output=1).
    n_input, n_hidden, n_output = 1, 32, 1
    N = 100

    key = jax.random.PRNGKey(0)
    k1, k2 = jax.random.split(key)
    w1, b1 = init_linear_params(k1, n_input, n_hidden)
    w2, b2 = init_linear_params(k2, n_hidden, n_output)

    # One-time parameter packing / padding (init-time cost, reused every call).
    params = pack_params(w1, b1, w2, b2)

    # Input identical to the torch demo.
    x = jnp.linspace(-1.0, 1.0, N, dtype=jnp.float32).reshape(N, 1)

    out = net_forward(x, params)
    out = jax.block_until_ready(out)

    # Pure-JAX reference of the same forward pass (un-packed params).
    ref = jnp.maximum(x @ w1 + b1, 0.0) @ w2 + b2
    assert out.shape == (N, n_output)
    assert jnp.allclose(out, ref, atol=1e-5, rtol=1e-5)

    print("KERNEL_OK")
</pallas_src>

<mosaic_0001>
module attributes {stable_mosaic.version = 11 : i64} {
  func.func @mlp_kernel(%arg0: i32, %arg1: memref<1x128xf32, #tpu.memory_space<vmem>>, %arg2: memref<40x3xf32, #tpu.memory_space<vmem>>, %arg3: memref<1x128xf32, #tpu.memory_space<vmem>>) attributes {dimension_semantics = [#tpu.dimension_semantics<parallel>], iteration_bounds = array<i64: 1>, scalar_prefetch = 0 : i64, scratch_operands = 0 : i64, tpu.core_type = #tpu.core_type<tc>, window_params = [{transform_indices = @transform_0, window_bounds = array<i64: 1, 128>}, {pipeline_mode = #tpu.pipeline_mode<synchronous>, transform_indices = @transform_1, window_bounds = array<i64: 40, 3>}, {transform_indices = @transform_2, window_bounds = array<i64: 1, 128>}]} {
    %c0 = arith.constant 0 : index
    %c0_0 = arith.constant 0 : index
    %0 = vector.load %arg1[%c0, %c0_0] : memref<1x128xf32, #tpu.memory_space<vmem>>, vector<1x128xf32>
    %c0_1 = arith.constant 0 : index
    %c0_2 = arith.constant 0 : index
    %1 = vector.load %arg2[%c0_1, %c0_2] : memref<40x3xf32, #tpu.memory_space<vmem>>, vector<40x1xf32>
    %c0_3 = arith.constant 0 : index
    %c1 = arith.constant 1 : index
    %2 = vector.load %arg2[%c0_3, %c1] : memref<40x3xf32, #tpu.memory_space<vmem>>, vector<40x1xf32>
    %c0_4 = arith.constant 0 : index
    %c2 = arith.constant 2 : index
    %3 = vector.load %arg2[%c0_4, %c2] : memref<40x3xf32, #tpu.memory_space<vmem>>, vector<40x1xf32>
    %4 = vector.broadcast %1 : vector<40x1xf32> to vector<40x128xf32>
    %5 = vector.broadcast %0 : vector<1x128xf32> to vector<40x128xf32>
    %6 = arith.mulf %4, %5 : vector<40x128xf32>
    %7 = vector.broadcast %2 : vector<40x1xf32> to vector<40x128xf32>
    %8 = arith.addf %6, %7 : vector<40x128xf32>
    %cst = arith.constant 0.000000e+00 : f32
    %9 = vector.broadcast %cst : f32 to vector<40x128xf32>
    %10 = arith.maximumf %8, %9 : vector<40x128xf32>
    %11 = vector.broadcast %3 : vector<40x1xf32> to vector<40x128xf32>
    %12 = arith.mulf %11, %10 : vector<40x128xf32>
    %cst_5 = arith.constant dense<0.000000e+00> : vector<128xf32>
    %13 = vector.multi_reduction <add>, %12, %cst_5 [0] : vector<40x128xf32> to vector<128xf32>
    %14 = vector.shape_cast %13 : vector<128xf32> to vector<1x128xf32>
    %c0_6 = arith.constant 0 : index
    %c0_7 = arith.constant 0 : index
    %15 = vector.load %arg3[%c0_6, %c0_7] : memref<1x128xf32, #tpu.memory_space<vmem>>, vector<1x128xf32>
    tpu.vector_store %arg3[%c0_6, %c0_7], %14 {strides = array<i32>} : memref<1x128xf32, #tpu.memory_space<vmem>>, vector<1x128xf32>,
    return
  }
  func.func @transform_0(%arg0: i32) -> (i32, i32) {
    %c0_i32 = arith.constant 0 : i32
    %c0_i32_0 = arith.constant 0 : i32
    return %c0_i32, %arg0 : i32, i32
  }
  func.func @transform_1(%arg0: i32) -> (i32, i32) {
    %c0_i32 = arith.constant 0 : i32
    %c0_i32_0 = arith.constant 0 : i32
    %c0_i32_1 = arith.constant 0 : i32
    return %c0_i32, %c0_i32_0 : i32, i32
  }
  func.func @transform_2(%arg0: i32) -> (i32, i32) {
    %c0_i32 = arith.constant 0 : i32
    %c0_i32_0 = arith.constant 0 : i32
    return %c0_i32, %arg0 : i32, i32
  }
}

</mosaic_0001>

<bundles_post_ra>
// kernel: net_forward.1
= control target key start
LH: loop header
LB: loop body
LE: loop exit
PB: predicated region body
PF: predicated region fallthrough
CT: control target
= control target key end

     0   :  { %v137_v0 = vmov 1   ;;  %v138_v1 = vmov 0   ;;  %v139_v7 = vmov 2   ;;  %s176_s1 = inlined_call_operand.vmem [shape: f32[40,3], index: 1, kind: input, shape index: {}]   ;;  %s177_s0 = inlined_call_operand.vmem [shape: f32[1,128], index: 0, kind: input, shape index: {}]   ;;  %s178_s2 = inlined_call_operand.vmem [shape: f32[1,128], index: 2, kind: output, shape index: {}]  }
   0x1   :  { %129 = vset.pattern.permute.xlu0 %v137_v0  ;;  %127 = vset.pattern.permute.xlu1 %v138_v1  ;;  %v14_v2 = vld [vmem:[%s176_s1 + $0x10] sm:$0xff]  ;;  %v13_v3 = vld [vmem:[%s176_s1 + $0x8] sm:$0xff]  ;;  %v12_v4 = vld [vmem:[%s176_s1] sm:$0xff] }
   0x2   :  { %29 = vperm.xlu1 %127, %v14_v2   ;;  %58 = vperm.xlu0 %129, %v13_v3   ;;  %v15_v5 = vld [vmem:[%s176_s1 + $0x18] sm:$0xff]  ;;  %v16_v6 = vld [vmem:[%s176_s1 + $0x20] sm:$0xff] }
   0x3   :  { %v123_v16 = vld [vmem:[%s177_s0] ss:$0 sm:$0xff] }
   0x6   :  { %128 = vset.pattern.permute.xlu1 %v137_v0  ;;  %130 = vset.pattern.permute.xlu0 %v138_v1 }
   0x7   :  { %19 = vperm.xlu0 %130, %v12_v4   ;;  %54 = vperm.xlu1 %128, %v12_v4  }
   0xb   :  { %24 = vperm.xlu0 %130, %v13_v3   ;;  %131 = vset.pattern.permute.xlu1 %v138_v1 }
   0xc   :  { %34 = vperm.xlu1 %131, %v15_v5  }
   0xf   :  { %39 = vperm.xlu0 %130, %v16_v6  }
  0x10   :  { %132 = vset.pattern.permute.xlu1 %v137_v0 }
  0x11   :  { %62 = vperm.xlu1 %132, %v14_v2  }
  0x13   :  { %134 = vset.pattern.permute.xlu0 %v139_v7 }
  0x14   :  { %88 = vperm.xlu0 %134, %v13_v3  }
  0x15   :  { %66 = vperm.xlu1 %132, %v15_v5  }
  0x18   :  { %96 = vperm.xlu0 %134, %v15_v5  }
  0x19   :  { %133 = vset.pattern.permute.xlu1 %v139_v7 }
  0x1a   :  { %84 = vperm.xlu1 %133, %v12_v4  }
  0x1e   :  { %135 = vset.pattern.permute.xlu1 %v137_v0 }
  0x1f   :  { %70 = vperm.xlu1 %135, %v16_v6  }
  0x23   :  { %136 = vset.pattern.permute.xlu1 %v139_v7 }
  0x24   :  { %92 = vperm.xlu1 %136, %v14_v2  }
  0x28   :  { %100 = vperm.xlu1 %136, %v16_v6  }
  0x81   :  { %v30_v8 = vpop.permute.xlu1 %29  ;;  %v59_v9 = vpop.permute.xlu0 %58 }
  0x82   :  { %v50_v23 = vmul.f32 %v123_v16, %v30_v8 }
  0x86   :  { %v55_v10 = vpop.permute.xlu1 %54  ;;  %v20_v11 = vpop.permute.xlu0 %19 }
  0x87   :  { %v48_v17 = vmul.f32 %v123_v16, %v20_v11 }
  0x89   :  { %v73_v21 = vadd.f32 %v55_v10, %v48_v17 }
  0x8a   :  { %v25_v14 = vpop.permute.xlu0 %24 }
  0x8b   :  { %v35_v12 = vpop.permute.xlu1 %34  ;;  %v49_v18 = vmul.f32 %v123_v16, %v25_v14  ;;  %v78_v26 = vmax.f32 %v73_v21, 0.0 }
  0x8c   :  { %v51_v24 = vmul.f32 %v123_v16, %v35_v12 }
  0x8d   :  { %v74_v22 = vadd.f32 %v59_v9, %v49_v18 }
  0x8e   :  { %v40_v19 = vpop.permute.xlu0 %39 }
  0x8f   :  { %v79_v28 = vmax.f32 %v74_v22, 0.0  ;;  %v52_v31 = vmul.f32 %v123_v16, %v40_v19 }
  0x90   :  { %v63_v13 = vpop.permute.xlu1 %62 }
  0x91   :  { %v75_v27 = vadd.f32 %v63_v13, %v50_v23 }
  0x93   :  { %v89_v25 = vpop.permute.xlu0 %88  ;;  %v80_v33 = vmax.f32 %v75_v27, 0.0 }
  0x94   :  { %v67_v15 = vpop.permute.xlu1 %66  ;;  %v104_v34 = vmul.f32 %v89_v25, %v79_v28 }
  0x95   :  { %v76_v29 = vadd.f32 %v67_v15, %v51_v24 }
  0x97   :  { %v81_v35 = vmax.f32 %v76_v29, 0.0  ;;  %v97_v37 = vpop.permute.xlu0 %96 }
  0x99   :  { %v85_v20 = vpop.permute.xlu1 %84  ;;  %v106_v41 = vmul.f32 %v97_v37, %v81_v35 }
  0x9a   :  { %v103_v32 = vmul.f32 %v85_v20, %v78_v26 }
  0x9c   :  { %v108_v39 = vadd.f32 %v104_v34, %v103_v32 }
  0x9e   :  { %v71_v30 = vpop.permute.xlu1 %70 }
  0x9f   :  { %v77_v36 = vadd.f32 %v71_v30, %v52_v31 }
  0xa1   :  { %v82_v42 = vmax.f32 %v77_v36, 0.0 }
  0xa3   :  { %v93_v38 = vpop.permute.xlu1 %92 }
  0xa4   :  { %v105_v40 = vmul.f32 %v93_v38, %v80_v33 }
  0xa6   :  { %v109_v43 = vadd.f32 %v108_v39, %v105_v40 }
  0xa7   :  { %v101_v44 = vpop.permute.xlu1 %100 }
  0xa8   :  { %v107_v45 = vmul.f32 %v101_v44, %v82_v42  ;;  %v110_v46 = vadd.f32 %v109_v43, %v106_v41 }
  0xaa   :  { %v111_v47 = vadd.f32 %v110_v46, %v107_v45 }
  0xac   :  { %v112_v48 = vrot.slane %v111_v47, 4 }
  0xae   :  { %v113_v49 = vadd.f32 %v112_v48, %v111_v47 }
  0xb0   :  { %v114_v50 = vrot.slane %v113_v49, 2 }
  0xb2   :  { %v115_v51 = vadd.f32 %v114_v50, %v113_v49 }
  0xb4   :  { %v116_v52 = vrot.slane %v115_v51, 1 }
  0xb6   :  { %v117_v53 = vadd.f32 %v116_v52, %v115_v51 }
  0xb8   :  { %118 = vst [vmem:[%s178_s2] sm:$0x1] %v117_v53 }

</bundles_post_ra>
